<compile_context>
chip_gen: v6e
topology: v6e:2x2x1
jax: 0.10.0
libtpu: 0.0.40
codegen_flags: <defaults>
</compile_context>

<pallas_src>
import jax
import jax.numpy as jnp
from jax.experimental import pallas as pl
from jax.experimental.pallas import tpu as pltpu


def dqn_kernel(x_ref, w1_ref, b1_ref, w2_ref, b2_ref, w3_ref, b3_ref, o_ref):
    x = x_ref[...]                      # (tb, n_obs) f32
    n_obs = x_ref.shape[1]

    # ---- Layer 1 on the VPU ------------------------------------------------
    # K = n_obs is tiny (e.g. 4): an MXU pass would burn ~1/3 of the vmatmul
    # budget multiplying zeros.  Do it as n_obs broadcast multiply-adds in f32
    # (v5e has no bf16 VPU), keeping the MXU free for layers 2 and 3.
    h1 = x[:, 0:1] * w1_ref[0:1, :] + b1_ref[...]
    for k in range(1, n_obs):           # tiny static loop (n_obs iterations)
        h1 = h1 + x[:, k:k + 1] * w1_ref[k:k + 1, :]
    h1 = jnp.maximum(h1, 0.0)

    # ---- Layers 2 & 3 on the MXU (bf16 operands, f32 accumulation) ---------
    h2 = jnp.dot(h1.astype(jnp.bfloat16), w2_ref[...],
                 preferred_element_type=jnp.float32) + b2_ref[...]
    h2 = jnp.maximum(h2, 0.0)

    out = jnp.dot(h2.astype(jnp.bfloat16), w3_ref[...],
                  preferred_element_type=jnp.float32) + b3_ref[...]
    o_ref[...] = out.astype(o_ref.dtype)


def _round_up(v, m):
    return ((v + m - 1) // m) * m


def prepare_params(params):
    """One-time weight prep, hoisted out of the per-call path.

    w1/b1 stay f32 (layer 1 runs on the VPU); w2/w3 are pre-cast to bf16 for
    the MXU; biases are f32 [1, out]."""
    w1, b1, w2, b2, w3, b3 = params
    as2d = lambda b: b.reshape(1, -1).astype(jnp.float32)
    return (w1.astype(jnp.float32), as2d(b1),
            w2.astype(jnp.bfloat16), as2d(b2),
            w3.astype(jnp.bfloat16), as2d(b3))


def dqn_forward(x, prepared_params, *, block_batch=4096, small_batch_threshold=2048):
    """Forward pass. prepared_params = prepare_params((w1,b1,w2,b2,w3,b3))."""
    w1, b1, w2, b2, w3, b3 = prepared_params
    B, n_obs = x.shape
    hidden = w1.shape[1]
    n_actions = w3.shape[1]

    if B <= small_batch_threshold:
        # Gridless fast path: whole problem is trivially VMEM-resident; avoids
        # per-grid-step overhead and any batch padding at typical RL sizes.
        vmem = pl.BlockSpec(memory_space=pltpu.MemorySpace.VMEM)
        return pl.pallas_call(
            dqn_kernel,
            out_shape=jax.ShapeDtypeStruct((B, n_actions), jnp.float32),
            in_specs=[vmem] * 7,
            out_specs=vmem,
        )(x, w1, b1, w2, b2, w3, b3)

    # ---- Tiled path: 1-D grid over the batch -------------------------------
    # Always >= 2 blocks (and an even count) so both TensorCores on v7x get
    # work; tile size derived from the block count, rounded to a multiple of 8
    # so the (tb, n_obs)/(tb, n_actions) blocks satisfy the (8,128) rule even
    # for arbitrary user-supplied block_batch.
    n_blocks = max(2, pl.cdiv(B, block_batch))
    if n_blocks % 2:
        n_blocks += 1
    tb = max(8, _round_up(pl.cdiv(B, n_blocks), 8))
    n_blocks = pl.cdiv(B, tb)
    B_pad = n_blocks * tb
    if B_pad != B:
        x = jnp.pad(x, ((0, B_pad - B), (0, 0)))

    const = lambda i: (0, 0)  # weights/biases: same block every step -> VMEM-resident
    out = pl.pallas_call(
        dqn_kernel,
        out_shape=jax.ShapeDtypeStruct((B_pad, n_actions), jnp.float32),
        grid=(n_blocks,),
        in_specs=[
            pl.BlockSpec((tb, n_obs), lambda i: (i, 0)),   # x: streamed, double-buffered
            pl.BlockSpec((n_obs, hidden), const),
            pl.BlockSpec((1, hidden), const),
            pl.BlockSpec((hidden, hidden), const),
            pl.BlockSpec((1, hidden), const),
            pl.BlockSpec((hidden, n_actions), const),
            pl.BlockSpec((1, n_actions), const),
        ],
        out_specs=pl.BlockSpec((tb, n_actions), lambda i: (i, 0)),
        compiler_params=pltpu.CompilerParams(
            dimension_semantics=("parallel",),      # megacore sharding on v7x
            vmem_limit_bytes=48 * 1024 * 1024,      # big tiles OK even on v5e's 16MiB default
        ),
    )(x, w1, b1, w2, b2, w3, b3)
    return out[:B] if B_pad != B else out


def init_dqn_params(key, n_observations, n_actions, hidden=128):
    """Deterministic init mimicking PyTorch Linear's uniform(-1/sqrt(fan_in), ...)."""
    keys = jax.random.split(key, 6)

    def linear(kw, kb, fan_in, fan_out):
        bound = 1.0 / jnp.sqrt(jnp.float32(fan_in))
        w = jax.random.uniform(kw, (fan_in, fan_out), jnp.float32, -bound, bound)
        b = jax.random.uniform(kb, (1, fan_out), jnp.float32, -bound, bound)
        return w, b

    w1, b1 = linear(keys[0], keys[1], n_observations, hidden)
    w2, b2 = linear(keys[2], keys[3], hidden, hidden)
    w3, b3 = linear(keys[4], keys[5], hidden, n_actions)
    return (w1, b1, w2, b2, w3, b3)


def dqn_reference(x, params):
    """Precision-matched reference: layer 1 in f32, layers 2/3 with bf16 MXU
    operands and f32 accumulation."""
    w1, b1, w2, b2, w3, b3 = params

    def mxu(a, w):
        return jnp.dot(a.astype(jnp.bfloat16), w.astype(jnp.bfloat16),
                       preferred_element_type=jnp.float32)

    h1 = jnp.maximum(
        jnp.dot(x, w1, precision=jax.lax.Precision.HIGHEST) + b1, 0.0)
    h2 = jnp.maximum(mxu(h1, w2) + b2, 0.0)
    return mxu(h2, w3) + b3


if __name__ == "__main__":
    n_observations = 4   # e.g. CartPole observation dim
    n_actions = 2        # e.g. CartPole action dim

    key = jax.random.PRNGKey(0)
    k_params, k_x1, k_x2 = jax.random.split(key, 3)
    params = init_dqn_params(k_params, n_observations, n_actions)
    kparams = prepare_params(params)   # one-time cast/reshape, hoisted out of the call path

    # 1) Small batch -> gridless single-shot path.
    x_small = jax.random.normal(k_x1, (8, n_observations), jnp.float32)
    out_small = jax.block_until_ready(dqn_forward(x_small, kparams))
    ref_small = dqn_reference(x_small, params)
    assert out_small.shape == (8, n_actions)
    assert jnp.allclose(out_small, ref_small, atol=1e-2, rtol=1e-2), \
        "small-batch mismatch vs reference"

    # 2) Non-tile-multiple batch with small overrides to exercise the tiled /
    #    gridded path (2 blocks of 104 rows, batch padded 200 -> 208).
    x_big = jax.random.normal(k_x2, (200, n_observations), jnp.float32)
    out_big = jax.block_until_ready(
        dqn_forward(x_big, kparams, block_batch=128, small_batch_threshold=64))
    ref_big = dqn_reference(x_big, params)
    assert out_big.shape == (200, n_actions)
    assert jnp.allclose(out_big, ref_big, atol=1e-2, rtol=1e-2), \
        "tiled-batch mismatch vs reference"

    print("KERNEL_OK")
</pallas_src>

<mosaic_0001>
module attributes {stable_mosaic.version = 11 : i64} {
  func.func @dqn_kernel(%arg0: memref<8x4xf32, #tpu.memory_space<vmem>>, %arg1: memref<4x128xf32, #tpu.memory_space<vmem>>, %arg2: memref<1x128xf32, #tpu.memory_space<vmem>>, %arg3: memref<128x128xbf16, #tpu.memory_space<vmem>>, %arg4: memref<1x128xf32, #tpu.memory_space<vmem>>, %arg5: memref<128x2xbf16, #tpu.memory_space<vmem>>, %arg6: memref<1x2xf32, #tpu.memory_space<vmem>>, %arg7: memref<8x2xf32, #tpu.memory_space<vmem>>) attributes {dimension_semantics = [], scalar_prefetch = 0 : i64, scratch_operands = 0 : i64, tpu.core_type = #tpu.core_type<tc>} {
    %c0 = arith.constant 0 : index
    %c0_0 = arith.constant 0 : index
    %0 = vector.load %arg0[%c0, %c0_0] : memref<8x4xf32, #tpu.memory_space<vmem>>, vector<8x4xf32>
    %1 = vector.extract_strided_slice %0 {offsets = [0, 0], sizes = [8, 1], strides = [1, 1]} : vector<8x4xf32> to vector<8x1xf32>
    %c0_1 = arith.constant 0 : index
    %c0_2 = arith.constant 0 : index
    %2 = vector.load %arg1[%c0_1, %c0_2] : memref<4x128xf32, #tpu.memory_space<vmem>>, vector<1x128xf32>
    %3 = vector.broadcast %1 : vector<8x1xf32> to vector<8x128xf32>
    %4 = vector.broadcast %2 : vector<1x128xf32> to vector<8x128xf32>
    %5 = arith.mulf %3, %4 : vector<8x128xf32>
    %c0_3 = arith.constant 0 : index
    %c0_4 = arith.constant 0 : index
    %6 = vector.load %arg2[%c0_3, %c0_4] : memref<1x128xf32, #tpu.memory_space<vmem>>, vector<1x128xf32>
    %7 = vector.broadcast %6 : vector<1x128xf32> to vector<8x128xf32>
    %8 = arith.addf %5, %7 : vector<8x128xf32>
    %9 = vector.extract_strided_slice %0 {offsets = [0, 1], sizes = [8, 1], strides = [1, 1]} : vector<8x4xf32> to vector<8x1xf32>
    %c1 = arith.constant 1 : index
    %c0_5 = arith.constant 0 : index
    %10 = vector.load %arg1[%c1, %c0_5] : memref<4x128xf32, #tpu.memory_space<vmem>>, vector<1x128xf32>
    %11 = vector.broadcast %9 : vector<8x1xf32> to vector<8x128xf32>
    %12 = vector.broadcast %10 : vector<1x128xf32> to vector<8x128xf32>
    %13 = arith.mulf %11, %12 : vector<8x128xf32>
    %14 = arith.addf %8, %13 : vector<8x128xf32>
    %15 = vector.extract_strided_slice %0 {offsets = [0, 2], sizes = [8, 1], strides = [1, 1]} : vector<8x4xf32> to vector<8x1xf32>
    %c2 = arith.constant 2 : index
    %c0_6 = arith.constant 0 : index
    %16 = vector.load %arg1[%c2, %c0_6] : memref<4x128xf32, #tpu.memory_space<vmem>>, vector<1x128xf32>
    %17 = vector.broadcast %15 : vector<8x1xf32> to vector<8x128xf32>
    %18 = vector.broadcast %16 : vector<1x128xf32> to vector<8x128xf32>
    %19 = arith.mulf %17, %18 : vector<8x128xf32>
    %20 = arith.addf %14, %19 : vector<8x128xf32>
    %21 = vector.extract_strided_slice %0 {offsets = [0, 3], sizes = [8, 1], strides = [1, 1]} : vector<8x4xf32> to vector<8x1xf32>
    %c3 = arith.constant 3 : index
    %c0_7 = arith.constant 0 : index
    %22 = vector.load %arg1[%c3, %c0_7] : memref<4x128xf32, #tpu.memory_space<vmem>>, vector<1x128xf32>
    %23 = vector.broadcast %21 : vector<8x1xf32> to vector<8x128xf32>
    %24 = vector.broadcast %22 : vector<1x128xf32> to vector<8x128xf32>
    %25 = arith.mulf %23, %24 : vector<8x128xf32>
    %26 = arith.addf %20, %25 : vector<8x128xf32>
    %cst = arith.constant 0.000000e+00 : f32
    %27 = vector.broadcast %cst : f32 to vector<8x128xf32>
    %28 = arith.maximumf %26, %27 : vector<8x128xf32>
    %29 = arith.truncf %28 : vector<8x128xf32> to vector<8x128xbf16>
    %c0_8 = arith.constant 0 : index
    %c0_9 = arith.constant 0 : index
    %30 = vector.load %arg3[%c0_8, %c0_9] : memref<128x128xbf16, #tpu.memory_space<vmem>>, vector<128x128xbf16>
    %cst_10 = arith.constant dense<0.000000e+00> : vector<8x128xf32>
    %31 = tpu.matmul %29, %30, %cst_10 {dimension_numbers = #tpu.dot_dimension_numbers<[1], [0], [0], [1], [0, 0, 1, 1], [], []>} : vector<8x128xbf16>, vector<128x128xbf16>, vector<8x128xf32> -> vector<8x128xf32>
    %c0_11 = arith.constant 0 : index
    %c0_12 = arith.constant 0 : index
    %32 = vector.load %arg4[%c0_11, %c0_12] : memref<1x128xf32, #tpu.memory_space<vmem>>, vector<1x128xf32>
    %33 = vector.broadcast %32 : vector<1x128xf32> to vector<8x128xf32>
    %34 = arith.addf %31, %33 : vector<8x128xf32>
    %cst_13 = arith.constant 0.000000e+00 : f32
    %35 = vector.broadcast %cst_13 : f32 to vector<8x128xf32>
    %36 = arith.maximumf %34, %35 : vector<8x128xf32>
    %37 = arith.truncf %36 : vector<8x128xf32> to vector<8x128xbf16>
    %c0_14 = arith.constant 0 : index
    %c0_15 = arith.constant 0 : index
    %38 = vector.load %arg5[%c0_14, %c0_15] : memref<128x2xbf16, #tpu.memory_space<vmem>>, vector<128x2xbf16>
    %cst_16 = arith.constant dense<0.000000e+00> : vector<8x2xf32>
    %39 = tpu.matmul %37, %38, %cst_16 {dimension_numbers = #tpu.dot_dimension_numbers<[1], [0], [0], [1], [0, 0, 1, 1], [], []>} : vector<8x128xbf16>, vector<128x2xbf16>, vector<8x2xf32> -> vector<8x2xf32>
    %c0_17 = arith.constant 0 : index
    %c0_18 = arith.constant 0 : index
    %40 = vector.load %arg6[%c0_17, %c0_18] : memref<1x2xf32, #tpu.memory_space<vmem>>, vector<1x2xf32>
    %41 = vector.broadcast %40 : vector<1x2xf32> to vector<8x2xf32>
    %42 = arith.addf %39, %41 : vector<8x2xf32>
    %c0_19 = arith.constant 0 : index
    %c0_20 = arith.constant 0 : index
    %43 = vector.load %arg7[%c0_19, %c0_20] : memref<8x2xf32, #tpu.memory_space<vmem>>, vector<8x2xf32>
    tpu.vector_store %arg7[%c0_19, %c0_20], %42 {strides = array<i32>} : memref<8x2xf32, #tpu.memory_space<vmem>>, vector<8x2xf32>,
    return
  }
}

</mosaic_0001>

<bundles_post_ra>
// kernel: tpu_custom_call.1
= control target key start
LH: loop header
LB: loop body
LE: loop exit
PB: predicated region body
PF: predicated region fallthrough
CT: control target
= control target key end

     0   :  { %v420_v0 = vmov 0   ;;  %v421_v2 = vmov 2   ;;  %v422_v4 = vmov 0.0   ;;  %v423_v6 = vmov 1   ;;  %s559_s0 = inlined_call_operand.vmem [shape: f32[8,4], index: 0, kind: input, shape index: {}]   ;;  %s560_s3 = inlined_call_operand.vmem [shape: bf16[128,128], index: 3, kind: input, shape index: {}]   ;;  %s561_s5 = inlined_call_operand.vmem [shape: bf16[128,2], index: 5, kind: input, shape index: {}]   ;;  %s562_s1 = inlined_call_operand.vmem [shape: f32[4,128], index: 1, kind: input, shape index: {}]   ;;  %s563_s2 = inlined_call_operand.vmem [shape: f32[1,128], index: 2, kind: input, shape index: {}]   ;;  %s564_s4 = inlined_call_operand.vmem [shape: f32[1,128], index: 4, kind: input, shape index: {}]   ;;  %s565_s6 = inlined_call_operand.vmem [shape: f32[1,2], index: 6, kind: input, shape index: {}]   ;;  %s566_s7 = inlined_call_operand.vmem [shape: f32[8,2], index: 7, kind: output, shape index: {}]  }
   0x1   :  { %399 = vset.pattern.permute.xlu0 %v420_v0  ;;  %v27_v1 = vld [vmem:[%s559_s0] sm:$0xff]  ;;  %401 = vset.pattern.permute.xlu1 %v421_v2  ;;  %v404_v3 = vld [vmem:[%s560_s3 + $0x38] sm:$0xff]   ;;  %v405_v5 = vld [vmem:[%s560_s3 + $0x30] sm:$0xff]   ;;  %v424_v7 = vmov 3   ;;  %vm425_vm0 = vmmov 0   ;;  %vm306_vm1 = vcmask 15360  }
   0x2   :  { %31 = vperm.xlu0 %399, %v27_v1   ;;  %60 = vperm.xlu1 %401, %v27_v1   ;;  %v406_v8 = vld [vmem:[%s560_s3 + $0x28] sm:$0xff]   ;;  %v407_v9 = vld [vmem:[%s560_s3 + $0x20] sm:$0xff]   ;;  %v408_v10 = vld [vmem:[%s560_s3 + $0x18] sm:$0xff]  }
   0x3   :  { %353 = vmatprep.subr.bf16.mxu0 %v422_v4  ;;  %373 = vmatprep.subr.bf16.mxu1 %v422_v4  ;;  %v412_v11 = vld [vmem:[%s561_s5 + $0x38] sm:$0xff]   ;;  %v413_v12 = vld [vmem:[%s561_s5 + $0x30] sm:$0xff]   ;;  %v414_v14 = vld [vmem:[%s561_s5 + $0x28] sm:$0xff]  }
   0x4   :  { %354 = vmatpush3.bf16.msra.mxu0 %v404_v3  ;;  %369 = vmatprep.mubr.msk.bf16.mxu0 %vm425_vm0, %v422_v4  ;;  %v409_v13 = vld [vmem:[%s560_s3 + $0x10] sm:$0xff]   ;;  %v410_v15 = vld [vmem:[%s560_s3 + $0x8] sm:$0xff]   ;;  %v415_v16 = vld [vmem:[%s561_s5 + $0x20] sm:$0xff]  }
   0x5   :  { %355 = vmatprep.subr.bf16.mxu0 %v422_v4  ;;  %389 = vmatprep.mubr.msk.bf16.mxu1 %vm425_vm0, %v422_v4  ;;  %v411_v17 = vld [vmem:[%s560_s3] sm:$0xff]   ;;  %v416_v18 = vld [vmem:[%s561_s5 + $0x18] sm:$0xff]   ;;  %v417_v19 = vld [vmem:[%s561_s5 + $0x10] sm:$0xff]  }
   0x6   :  { %400 = vset.pattern.permute.xlu0 %v423_v6  ;;  %402 = vset.pattern.permute.xlu1 %v424_v7  ;;  %v312_v20 = vld [vmem:[%s562_s1] ss:$0 sm:$0xff]  ;;  %v314_v25 = vld [vmem:[%s562_s1 + $0x1] ss:$0 sm:$0xff]  ;;  %v315_v26 = vld [vmem:[%s562_s1 + $0x2] ss:$0 sm:$0xff] }
   0x7   :  { %49 = vperm.xlu0 %400, %v27_v1   ;;  %71 = vperm.xlu1 %402, %v27_v1   ;;  %v313_v24 = vld [vmem:[%s563_s2] ss:$0 sm:$0xff]  ;;  %v316_v28 = vld [vmem:[%s562_s1 + $0x3] ss:$0 sm:$0xff]  ;;  %v418_v39 = vld [vmem:[%s561_s5 + $0x8] sm:$0xff]  }
   0x8   :  { %356 = vmatpush3.bf16.msra.mxu0 %v405_v5  ;;  %374 = vmatpush3.bf16.msra.mxu1 %v412_v11  ;;  %v419_v40 = vld [vmem:[%s561_s5] sm:$0xff]  }
   0x9   :  { %357 = vmatprep.subr.bf16.mxu0 %v422_v4  ;;  %375 = vmatprep.subr.bf16.mxu1 %v422_v4  ;;  %v317_v41 = vld [vmem:[%s564_s4] ss:$0 sm:$0xff] }
   0xa   :  { %v326_v49 = vld [vmem:[%s565_s6] ss:$0 sm:$0xff] }
   0xb   :  { %403 = vset.pattern.permute.xlu0 %v424_v7 }
   0xc   :  { %358 = vmatpush3.bf16.msra.mxu0 %v406_v8  ;;  %376 = vmatpush3.bf16.msra.mxu1 %v413_v12 }
   0xd   :  { %359 = vmatprep.subr.bf16.mxu0 %v422_v4  ;;  %377 = vmatprep.subr.bf16.mxu1 %v422_v4 }
  0x10   :  { %360 = vmatpush3.bf16.msra.mxu0 %v407_v9  ;;  %378 = vmatpush3.bf16.msra.mxu1 %v414_v14 }
  0x11   :  { %361 = vmatprep.subr.bf16.mxu0 %v422_v4  ;;  %379 = vmatprep.subr.bf16.mxu1 %v422_v4 }
  0x14   :  { %362 = vmatpush3.bf16.msra.mxu0 %v408_v10  ;;  %380 = vmatpush3.bf16.msra.mxu1 %v415_v16 }
  0x15   :  { %363 = vmatprep.subr.bf16.mxu0 %v422_v4  ;;  %381 = vmatprep.subr.bf16.mxu1 %v422_v4 }
  0x18   :  { %364 = vmatpush3.bf16.msra.mxu0 %v409_v13  ;;  %382 = vmatpush3.bf16.msra.mxu1 %v416_v18 }
  0x19   :  { %365 = vmatprep.subr.bf16.mxu0 %v422_v4  ;;  %383 = vmatprep.subr.bf16.mxu1 %v422_v4 }
  0x1c   :  { %366 = vmatpush3.bf16.msra.mxu0 %v410_v15  ;;  %384 = vmatpush3.bf16.msra.mxu1 %v417_v19 }
  0x1d   :  { %367 = vmatprep.subr.bf16.mxu0 %v422_v4  ;;  %385 = vmatprep.subr.bf16.mxu1 %v422_v4 }
  0x20   :  { %368 = vmatpush3.bf16.msra.mxu0 %v411_v17  ;;  %386 = vmatpush3.bf16.msra.mxu1 %v418_v39 }
  0x21   :  { %387 = vmatprep.subr.bf16.mxu1 %v422_v4 }
  0x24   :  { %388 = vmatpush3.bf16.msra.mxu1 %v419_v40 }
  0x7d   :  { %v32_v21 = vpop.permute.xlu0 %31  ;;  %v61_v22 = vpop.permute.xlu1 %60 }
  0x7e   :  { %v38_v23 = vmul.f32 %v312_v20, %v32_v21  ;;  %v67_v32 = vmul.f32 %v315_v26, %v61_v22 }
  0x80   :  { %v46_v30 = vadd.f32 %v313_v24, %v38_v23 }
  0x82   :  { %v50_v27 = vpop.permute.xlu0 %49  ;;  %v72_v29 = vpop.permute.xlu1 %71 }
  0x83   :  { %v56_v31 = vmul.f32 %v314_v25, %v50_v27  ;;  %v78_v34 = vmul.f32 %v316_v28, %v72_v29 }
  0x85   :  { %v57_v33 = vadd.f32 %v56_v31, %v46_v30 }
  0x87   :  { %v68_v35 = vadd.f32 %v67_v32, %v57_v33 }
  0x89   :  { %v79_v36 = vadd.f32 %v78_v34, %v68_v35 }
  0x8b   :  { %v80_v37 = vmax.f32 %v79_v36, 0.0 }
  0x8d   :  { %v81_v38 = vpack.c.bf16 %v80_v37, %v80_v37 }
  0x8f   :  { %370 = vmatmul.mubr.bf16.vlgmr.msra.gmra.mxu0 %v81_v38 }
 0x14f   :  { %v187_v42 = vpop.f32.mrf.mxu0 }
 0x150   :  { %v188_v43 = vadd.f32 %v317_v41, %v187_v42 }
 0x151   :  { %v371_v44 = vpop.f32.mrf.mxu0 }
 0x152   :  { %v193_v45 = vmax.f32 %v188_v43, 0.0 }
 0x153   :  { %v190_v46 = vpop.f32.mrf.mxu0 }
 0x154   :  { %v194_v47 = vpack.c.bf16 %v193_v45, %v193_v45 }
 0x155   :  { %v372_v48 = vpop.f32.mrf.mxu0 }
 0x156   :  { %390 = vmatmul.mubr.bf16.vlgmr.msra.gmra.mxu1 %v194_v47 }
 0x216   :  { %v300_v50 = vpop.f32.mrf.mxu1 }
 0x217   :  { %v301_v51 = vadd.f32 %v326_v49, %v300_v50 }
 0x218   :  { %v391_v52 = vpop.f32.mrf.mxu1 }
 0x219   :  { %307 = vst.msk [vmem:[%s566_s7] sm:$0xff] %vm306_vm1, %v301_v51 }
 0x21a   :  { %v303_v53 = vpop.f32.mrf.mxu1 }
 0x21c   :  { %v392_v54 = vpop.f32.mrf.mxu1 }

</bundles_post_ra>
